<compile_context>
chip_gen: v7x
topology: tpu7x:2x2x1
jax: 0.10.0
libtpu: 0.0.40
codegen_flags: <defaults>
</compile_context>

<pallas_src>
import jax
import jax.numpy as jnp
from jax.experimental import pallas as pl
from jax.experimental.pallas import tpu as pltpu

HIDDEN = 4       # `hidden` in TFN.__init__
NUM_ORDERS = 4   # degree range (0, 1): 1 + 3 spherical orders


# ----------------------------------------------------------------------------
# helpers used inside the kernel (traced python)
# ----------------------------------------------------------------------------
def _ssp(x):
    # ShiftedSoftPlus: softplus(x) - log(2)  (numerically stable form)
    return jnp.maximum(x, 0.0) + jnp.log(1.0 + jnp.exp(-jnp.abs(x))) - jnp.log(2.0)


def _tile4(x):
    # (H, Ep) -> (4H, Ep): replicate over the 4 output-order blocks so the
    # slab-rotation FMAs run on full vregs.
    return jnp.concatenate([x, x, x, x], axis=0)


def _rot_slab(d, x_slab, H):
    # d: (4, 4H, Ep) slab stack with d[j] block i = D[:, i, j] (or D^T variant)
    # x_slab: (4H, Ep) with block j = x_j.
    # out block i = sum_j D[:, i, j] * x_j  -> 4 full-(4H,Ep) FMAs.
    acc = d[0] * _tile4(x_slab[0:H, :])
    for j in range(1, 4):
        acc = acc + d[j] * _tile4(x_slab[j * H:(j + 1) * H, :])
    return acc


def _norm_act(z, H):
    # NormAct over degree range (0,1).
    # TODO(synk): equitorch NormAct convention assumed: degree-0 -> act(x);
    #             degree-1 -> x * act(||x||)/||x|| (per channel, no bias).
    z0 = z[0:H, :]
    z1 = z[H:2 * H, :]
    z2 = z[2 * H:3 * H, :]
    z3 = z[3 * H:4 * H, :]
    q = z1 * z1 + z2 * z2 + z3 * z3 + 1e-24
    s1 = _ssp(jnp.sqrt(q)) * jax.lax.rsqrt(q)      # act(||x||)/||x|| (EUP rsqrt)
    return jnp.concatenate([_ssp(z0), z1 * s1, z2 * s1, z3 * s1], axis=0)


# ----------------------------------------------------------------------------
# the single fused Pallas kernel
# ----------------------------------------------------------------------------
def tfn_fused_kernel(emb_ref, cut_ref, dm_ref, dtc_ref, g_ref, s_ref, p_ref,
                     x0t_ref, pw_ref, pb_ref, wd1_ref, wd2_ref, wd3_ref,
                     wo_ref, bo_ref, o_ref):
    H = wd3_ref.shape[0]
    cut = cut_ref[...]                                          # (1, Ep)
    dm = dm_ref[...]                                            # (4, 4H, Ep) rot_on(D_in)
    dtc = dtc_ref[...]                                          # (4, 4H, Ep) cut*rot_on(DT_out)

    # fused weight producers for all three layers: one (10H,10)x(10,Ep) matmul
    wflat = jnp.dot(pw_ref[...], emb_ref[...],
                    preferred_element_type=jnp.float32) + pb_ref[...]        # (10H, Ep)

    # ---------------- layer 1: L_in=0 -> L_out=(0,1), C 1->H, not channel_wise
    # gather x_j = x[src] folded into one (1,N)x(N,Ep) matmul
    xsrc = jnp.dot(x0t_ref[...], g_ref[...],
                   preferred_element_type=jnp.float32)                       # (1, Ep)
    y0 = wflat[0:H, :] * xsrc                                   # (l=0, m=0) path
    y2 = wflat[H:2 * H, :] * xsrc                               # (l=1, m=0) path
    # rot_on(DT_out) with cutoff pre-folded; m=+-1 inputs are zero -> only j in {0,2}
    msg = dtc[0] * _tile4(y0) + dtc[2] * _tile4(y2)             # (4H, Ep)
    agg = jnp.dot(msg, s_ref[...],
                  preferred_element_type=jnp.float32)           # scatter-sum (4H, N)
    z = jnp.dot(wd1_ref[...], agg,
                preferred_element_type=jnp.float32)             # DegreeWiseLinear
    hn = _norm_act(z, H)                                        # NormAct(1, SSP)

    # ---------------- layer 2: L (0,1)->(0,1), channel_wise, 6 SO(2) weights -
    xg = jnp.dot(hn, g_ref[...], preferred_element_type=jnp.float32)         # (4H, Ep)
    xr = _rot_slab(dm, xg, H)                                   # rot_on(D_in)
    xr0, xr1, xr2, xr3 = (xr[m * H:(m + 1) * H, :] for m in range(4))
    w = [wflat[(2 + k) * H:(3 + k) * H, :] for k in range(6)]
    # TODO(synk): assumed equitorch SO2Linear weight ordering
    #   [(0->0,m0),(0->1,m0),(1->0,m0),(1->1,m0),(1->1,m1_re),(1->1,m1_im)]
    #   with m=1 coupling [[wr,-wi],[wi,wr]] acting on (x_{-1}, x_{+1}).
    y = jnp.concatenate(
        [w[0] * xr0 + w[2] * xr2,                               # (l=0, m=0)
         w[4] * xr1 - w[5] * xr3,                               # (l=1, m=-1)
         w[1] * xr0 + w[3] * xr2,                               # (l=1, m=0)
         w[5] * xr1 + w[4] * xr3],                              # (l=1, m=+1)
        axis=0)                                                 # (4H, Ep)
    msg = _rot_slab(dtc, y, H)                                  # rot_on(DT_out)*cut
    agg = jnp.dot(msg, s_ref[...], preferred_element_type=jnp.float32)
    z = jnp.dot(wd2_ref[...], agg, preferred_element_type=jnp.float32)
    hn = _norm_act(z, H)

    # ---------------- layer 3: L (0,1)->0, channel_wise, 2 SO(2) weights -----
    xg = jnp.dot(hn, g_ref[...], preferred_element_type=jnp.float32)         # (4H, Ep)
    xg0, xg1, xg2, xg3 = (xg[m * H:(m + 1) * H, :] for m in range(4))
    # only m=0 paths feed l_out=0 -> just output rows 0 and 2 of rot_on(D_in);
    # degree-0 output rotation is identity -> dropped.
    xr0 = (dm[0, 0:H, :] * xg0 + dm[1, 0:H, :] * xg1
           + dm[2, 0:H, :] * xg2 + dm[3, 0:H, :] * xg3)
    xr2 = (dm[0, 2 * H:3 * H, :] * xg0 + dm[1, 2 * H:3 * H, :] * xg1
           + dm[2, 2 * H:3 * H, :] * xg2 + dm[3, 2 * H:3 * H, :] * xg3)
    msg3 = (wflat[8 * H:9 * H, :] * xr0 + wflat[9 * H:10 * H, :] * xr2) * cut
    agg = jnp.dot(msg3, s_ref[...], preferred_element_type=jnp.float32)      # (H, N)
    z = jnp.dot(wd3_ref[...], agg, preferred_element_type=jnp.float32)
    h3 = z * (1.0 / (1.0 + jnp.exp(-z)))                        # nn.SiLU

    # ---------------- pooling + output head (softmax over 8 classes) --------
    pooled = jnp.dot(h3, p_ref[...], preferred_element_type=jnp.float32)     # (H, B)
    logits = jnp.dot(wo_ref[...], pooled,
                     preferred_element_type=jnp.float32) + bo_ref[...]       # (8, B)
    m = jnp.max(logits, axis=0, keepdims=True)
    e = jnp.exp(logits - m)
    o_ref[...] = e / jnp.sum(e, axis=0, keepdims=True)


# ----------------------------------------------------------------------------
# parameters
# ----------------------------------------------------------------------------
def init_params(key, hidden=HIDDEN):
    ks = jax.random.split(key, 13)

    def lin_w(k, fi, fo):
        return jax.random.normal(k, (fi, fo), jnp.float32) / jnp.sqrt(float(fi))

    return {
        "p1_w": lin_w(ks[0], 10, 2 * hidden),
        "p1_b": 0.01 * jax.random.normal(ks[1], (1, 2 * hidden), jnp.float32),
        "p2_w": lin_w(ks[2], 10, 6 * hidden),
        "p2_b": 0.01 * jax.random.normal(ks[3], (1, 6 * hidden), jnp.float32),
        "p3_w": lin_w(ks[4], 10, 2 * hidden),
        "p3_b": 0.01 * jax.random.normal(ks[5], (1, 2 * hidden), jnp.float32),
        "l1_w0": lin_w(ks[6], hidden, hidden),
        "l1_w1": lin_w(ks[7], hidden, hidden),
        "l2_w0": lin_w(ks[8], hidden, hidden),
        "l2_w1": lin_w(ks[9], hidden, hidden),
        "l3_w0": lin_w(ks[10], hidden, hidden),
        "out_w": lin_w(ks[11], hidden, 8),
        "out_b": 0.01 * jax.random.normal(ks[12], (1, 8), jnp.float32),
    }


def fuse_params(p, hidden=HIDDEN):
    """Build the kernel-friendly (transposed / block-diagonal / fused) tensors once."""
    H = hidden
    pw = jnp.concatenate([p["p1_w"], p["p2_w"], p["p3_w"]], axis=1).T        # (10H, 10)
    pb = jnp.concatenate([p["p1_b"], p["p2_b"], p["p3_b"]], axis=1).T        # (10H, 1)

    def block_diag4(w0, w1):
        Z = jnp.zeros((H, H), jnp.float32)
        w0t, w1t = w0.T, w1.T
        return jnp.concatenate([
            jnp.concatenate([w0t, Z, Z, Z], axis=1),
            jnp.concatenate([Z, w1t, Z, Z], axis=1),
            jnp.concatenate([Z, Z, w1t, Z], axis=1),
            jnp.concatenate([Z, Z, Z, w1t], axis=1)], axis=0)                # (4H, 4H)

    return {
        "pw": pw, "pb": pb,
        "wd1": block_diag4(p["l1_w0"], p["l1_w1"]),
        "wd2": block_diag4(p["l2_w0"], p["l2_w1"]),
        "wd3": p["l3_w0"].T,
        "wo": p["out_w"].T,          # (8, H)
        "bo": p["out_b"].T,          # (8, 1)
    }


# ----------------------------------------------------------------------------
# graph constants (precomputed once, outside the forward pass)
# ----------------------------------------------------------------------------
def build_graph_constants(x, edge_index, D1, edge_len, batch, num_graphs,
                          hidden=HIDDEN):
    H = hidden
    N = x.shape[0]
    E = edge_index.shape[1]
    Ep = ((E + 127) // 128) * 128            # pad edge axis to full 128-lane vregs
    src, dst = edge_index[0], edge_index[1]

    # padded edges get d=10 -> basis ~0, cutoff 0 (and zero scatter rows anyway)
    d = jnp.full((Ep,), 10.0, jnp.float32).at[:E].set(edge_len.astype(jnp.float32))

    # TODO(synk): GaussianBasisExpansion(0.1, 10, 0.7, 1.7) assumed as
    #             exp(-(d-mu_k)^2 / (2*0.1^2)), mu_k = linspace(0.7, 1.7, 10).
    mu = jnp.linspace(0.7, 1.7, 10, dtype=jnp.float32)
    emb = jnp.exp(-50.0 * (d[None, :] - mu[:, None]) ** 2)                   # (10, Ep)

    # TODO(synk): PolynomialCutoff(1.5) assumed as the p=6 polynomial envelope.
    u = d * (1.0 / 1.5)
    cut = jnp.where(d < 1.5,
                    1.0 - 28.0 * u ** 6 + 48.0 * u ** 7 - 21.0 * u ** 8,
                    0.0).reshape(1, Ep)                                      # (1, Ep)

    D1p = jnp.zeros((Ep, 4, 4), jnp.float32).at[:E].set(D1.astype(jnp.float32))
    # input-rotation slabs: dm[j, i*H:(i+1)*H, e] = D[e, i, j]
    dm = jnp.stack([jnp.repeat(D1p[:, :, j].T, H, axis=0) for j in range(4)],
                   axis=0)                                                   # (4, 4H, Ep)
    # output-rotation slabs with cutoff folded: dtc[j, i*H:(i+1)*H, e] = cut[e]*D[e, j, i]
    dtc = jnp.stack([jnp.repeat(D1p[:, j, :].T, H, axis=0) * cut for j in range(4)],
                    axis=0)                                                  # (4, 4H, Ep)

    G = jnp.zeros((N, Ep), jnp.float32).at[:, :E].set(
        jax.nn.one_hot(src, N, dtype=jnp.float32).T)                         # gather
    S = jnp.zeros((Ep, N), jnp.float32).at[:E, :].set(
        jax.nn.one_hot(dst, N, dtype=jnp.float32))                           # scatter
    P = jax.nn.one_hot(batch, num_graphs, dtype=jnp.float32)                 # (N, B) pool
    x0t = x.astype(jnp.float32).reshape(1, N)                                # (1, N)
    return {"emb": emb, "cut": cut, "dm": dm, "dtc": dtc, "G": G, "S": S,
            "P": P, "x0t": x0t, "N": N, "Ep": Ep, "B": num_graphs}


# ----------------------------------------------------------------------------
# forward: one fused pallas_call (no scratch; everything stays in registers)
# ----------------------------------------------------------------------------
def tfn_forward(gc, fp, hidden=HIDDEN):
    B = gc["B"]
    vmem = lambda: pl.BlockSpec(memory_space=pltpu.MemorySpace.VMEM)
    args = (gc["emb"], gc["cut"], gc["dm"], gc["dtc"], gc["G"], gc["S"],
            gc["P"], gc["x0t"], fp["pw"], fp["pb"], fp["wd1"], fp["wd2"],
            fp["wd3"], fp["wo"], fp["bo"])
    out_t = pl.pallas_call(
        tfn_fused_kernel,
        out_shape=jax.ShapeDtypeStruct((8, B), jnp.float32),
        in_specs=[vmem() for _ in args],
        out_specs=vmem(),
    )(*args)
    # TODO(synk): non-toy graphs need the edge-tiled PrefetchScalarGridSpec
    #             variant described at the top of the file.
    return out_t.T                                               # (B, 8)


# ----------------------------------------------------------------------------
# main
# ----------------------------------------------------------------------------
if __name__ == "__main__":
    key = jax.random.PRNGKey(0)
    kp, ke, ka = jax.random.split(key, 3)

    B = 2                       # two tetris-like graphs
    nodes_per_graph = 4
    N = B * nodes_per_graph

    # fully-connected (no self-loop) edges within each graph
    edges = []
    for g in range(B):
        for i in range(nodes_per_graph):
            for j in range(nodes_per_graph):
                if i != j:
                    edges.append((g * nodes_per_graph + i, g * nodes_per_graph + j))
    edge_index = jnp.array(edges, dtype=jnp.int32).T        # (2, 24)
    E = edge_index.shape[1]
    batch = jnp.repeat(jnp.arange(B, dtype=jnp.int32), nodes_per_graph)
    x = jnp.ones((N, 1), jnp.float32)
    edge_len = jax.random.uniform(ke, (E,), jnp.float32, 0.8, 1.6)

    # block-diagonal degree-(0,1) Wigner matrices: D[:,0,0]=1, D[:,1:,1:] = rotation
    ang = jax.random.uniform(ka, (E, 3), jnp.float32, 0.0, 2.0 * jnp.pi)
    ca, sa = jnp.cos(ang[:, 0]), jnp.sin(ang[:, 0])
    cb, sb = jnp.cos(ang[:, 1]), jnp.sin(ang[:, 1])
    cc, sc = jnp.cos(ang[:, 2]), jnp.sin(ang[:, 2])
    zero, one = jnp.zeros_like(ca), jnp.ones_like(ca)
    Rz1 = jnp.stack([jnp.stack([ca, -sa, zero], -1),
                     jnp.stack([sa, ca, zero], -1),
                     jnp.stack([zero, zero, one], -1)], -2)
    Ry = jnp.stack([jnp.stack([cb, zero, sb], -1),
                    jnp.stack([zero, one, zero], -1),
                    jnp.stack([-sb, zero, cb], -1)], -2)
    Rz2 = jnp.stack([jnp.stack([cc, -sc, zero], -1),
                     jnp.stack([sc, cc, zero], -1),
                     jnp.stack([zero, zero, one], -1)], -2)
    R = jnp.einsum("eij,ejk,ekl->eil", Rz1, Ry, Rz2)
    D1 = jnp.zeros((E, 4, 4), jnp.float32)
    D1 = D1.at[:, 0, 0].set(1.0)
    D1 = D1.at[:, 1:, 1:].set(R)

    params = init_params(kp, HIDDEN)
    fused = fuse_params(params, HIDDEN)
    gconst = build_graph_constants(x, edge_index, D1, edge_len, batch, B, HIDDEN)

    out = tfn_forward(gconst, fused, HIDDEN)
    jax.block_until_ready(out)
    assert out.shape == (B, 8)
    assert bool(jnp.all(jnp.isfinite(out)))
    assert bool(jnp.all(jnp.abs(jnp.sum(out, axis=-1) - 1.0) < 1e-3))
    print("KERNEL_OK")
</pallas_src>

<mosaic_0001>
module attributes {stable_mosaic.version = 11 : i64} {
  func.func @tfn_fused_kernel(%arg0: memref<10x128xf32, #tpu.memory_space<vmem>>, %arg1: memref<1x128xf32, #tpu.memory_space<vmem>>, %arg2: memref<4x16x128xf32, #tpu.memory_space<vmem>>, %arg3: memref<4x16x128xf32, #tpu.memory_space<vmem>>, %arg4: memref<8x128xf32, #tpu.memory_space<vmem>>, %arg5: memref<128x8xf32, #tpu.memory_space<vmem>>, %arg6: memref<8x2xf32, #tpu.memory_space<vmem>>, %arg7: memref<1x8xf32, #tpu.memory_space<vmem>>, %arg8: memref<40x10xf32, #tpu.memory_space<vmem>>, %arg9: memref<40x1xf32, #tpu.memory_space<vmem>>, %arg10: memref<16x16xf32, #tpu.memory_space<vmem>>, %arg11: memref<16x16xf32, #tpu.memory_space<vmem>>, %arg12: memref<4x4xf32, #tpu.memory_space<vmem>>, %arg13: memref<8x4xf32, #tpu.memory_space<vmem>>, %arg14: memref<8x1xf32, #tpu.memory_space<vmem>>, %arg15: memref<8x2xf32, #tpu.memory_space<vmem>>) attributes {dimension_semantics = [], scalar_prefetch = 0 : i64, scratch_operands = 0 : i64, tpu.core_type = #tpu.core_type<tc>} {
    %c0 = arith.constant 0 : index
    %c0_0 = arith.constant 0 : index
    %0 = vector.load %arg1[%c0, %c0_0] : memref<1x128xf32, #tpu.memory_space<vmem>>, vector<1x128xf32>
    %c0_1 = arith.constant 0 : index
    %c0_2 = arith.constant 0 : index
    %c0_3 = arith.constant 0 : index
    %1 = vector.load %arg2[%c0_1, %c0_2, %c0_3] : memref<4x16x128xf32, #tpu.memory_space<vmem>>, vector<4x16x128xf32>
    %c0_4 = arith.constant 0 : index
    %c0_5 = arith.constant 0 : index
    %c0_6 = arith.constant 0 : index
    %2 = vector.load %arg3[%c0_4, %c0_5, %c0_6] : memref<4x16x128xf32, #tpu.memory_space<vmem>>, vector<4x16x128xf32>
    %c0_7 = arith.constant 0 : index
    %c0_8 = arith.constant 0 : index
    %3 = vector.load %arg8[%c0_7, %c0_8] : memref<40x10xf32, #tpu.memory_space<vmem>>, vector<40x10xf32>
    %c0_9 = arith.constant 0 : index
    %c0_10 = arith.constant 0 : index
    %4 = vector.load %arg0[%c0_9, %c0_10] : memref<10x128xf32, #tpu.memory_space<vmem>>, vector<10x128xf32>
    %cst = arith.constant dense<0.000000e+00> : vector<40x128xf32>
    %5 = tpu.matmul %3, %4, %cst {dimension_numbers = #tpu.dot_dimension_numbers<[1], [0], [0], [1], [0, 0, 1, 1], [], []>} : vector<40x10xf32>, vector<10x128xf32>, vector<40x128xf32> -> vector<40x128xf32>
    %c0_11 = arith.constant 0 : index
    %c0_12 = arith.constant 0 : index
    %6 = vector.load %arg9[%c0_11, %c0_12] : memref<40x1xf32, #tpu.memory_space<vmem>>, vector<40x1xf32>
    %7 = vector.broadcast %6 : vector<40x1xf32> to vector<40x128xf32>
    %8 = arith.addf %5, %7 : vector<40x128xf32>
    %c0_13 = arith.constant 0 : index
    %c0_14 = arith.constant 0 : index
    %9 = vector.load %arg7[%c0_13, %c0_14] : memref<1x8xf32, #tpu.memory_space<vmem>>, vector<1x8xf32>
    %c0_15 = arith.constant 0 : index
    %c0_16 = arith.constant 0 : index
    %10 = vector.load %arg4[%c0_15, %c0_16] : memref<8x128xf32, #tpu.memory_space<vmem>>, vector<8x128xf32>
    %cst_17 = arith.constant dense<0.000000e+00> : vector<1x128xf32>
    %11 = tpu.matmul %9, %10, %cst_17 {dimension_numbers = #tpu.dot_dimension_numbers<[1], [0], [0], [1], [0, 0, 1, 1], [], []>} : vector<1x8xf32>, vector<8x128xf32>, vector<1x128xf32> -> vector<1x128xf32>
    %12 = vector.extract_strided_slice %8 {offsets = [0, 0], sizes = [4, 128], strides = [1, 1]} : vector<40x128xf32> to vector<4x128xf32>
    %13 = vector.broadcast %11 : vector<1x128xf32> to vector<4x128xf32>
    %14 = arith.mulf %12, %13 : vector<4x128xf32>
    %15 = vector.extract_strided_slice %8 {offsets = [4, 0], sizes = [4, 128], strides = [1, 1]} : vector<40x128xf32> to vector<4x128xf32>
    %16 = vector.broadcast %11 : vector<1x128xf32> to vector<4x128xf32>
    %17 = arith.mulf %15, %16 : vector<4x128xf32>
    %18 = vector.extract_strided_slice %2 {offsets = [0, 0, 0], sizes = [1, 16, 128], strides = [1, 1, 1]} : vector<4x16x128xf32> to vector<1x16x128xf32>
    %19 = vector.shape_cast %18 : vector<1x16x128xf32> to vector<16x128xf32>
    %20 = tpu.concatenate %14, %14, %14, %14 in 0 : vector<4x128xf32>, vector<4x128xf32>, vector<4x128xf32>, vector<4x128xf32> -> vector<16x128xf32>
    %21 = arith.mulf %19, %20 : vector<16x128xf32>
    %22 = vector.extract_strided_slice %2 {offsets = [2, 0, 0], sizes = [1, 16, 128], strides = [1, 1, 1]} : vector<4x16x128xf32> to vector<1x16x128xf32>
    %23 = vector.shape_cast %22 : vector<1x16x128xf32> to vector<16x128xf32>
    %24 = tpu.concatenate %17, %17, %17, %17 in 0 : vector<4x128xf32>, vector<4x128xf32>, vector<4x128xf32>, vector<4x128xf32> -> vector<16x128xf32>
    %25 = arith.mulf %23, %24 : vector<16x128xf32>
    %26 = arith.addf %21, %25 : vector<16x128xf32>
    %c0_18 = arith.constant 0 : index
    %c0_19 = arith.constant 0 : index
    %27 = vector.load %arg5[%c0_18, %c0_19] : memref<128x8xf32, #tpu.memory_space<vmem>>, vector<128x8xf32>
    %cst_20 = arith.constant dense<0.000000e+00> : vector<16x8xf32>
    %28 = tpu.matmul %26, %27, %cst_20 {dimension_numbers = #tpu.dot_dimension_numbers<[1], [0], [0], [1], [0, 0, 1, 1], [], []>} : vector<16x128xf32>, vector<128x8xf32>, vector<16x8xf32> -> vector<16x8xf32>
    %c0_21 = arith.constant 0 : index
    %c0_22 = arith.constant 0 : index
    %29 = vector.load %arg10[%c0_21, %c0_22] : memref<16x16xf32, #tpu.memory_space<vmem>>, vector<16x16xf32>
    %cst_23 = arith.constant dense<0.000000e+00> : vector<16x8xf32>
    %30 = tpu.matmul %29, %28, %cst_23 {dimension_numbers = #tpu.dot_dimension_numbers<[1], [0], [0], [1], [0, 0, 1, 1], [], []>} : vector<16x16xf32>, vector<16x8xf32>, vector<16x8xf32> -> vector<16x8xf32>
    %31 = vector.extract_strided_slice %30 {offsets = [0, 0], sizes = [4, 8], strides = [1, 1]} : vector<16x8xf32> to vector<4x8xf32>
    %32 = vector.extract_strided_slice %30 {offsets = [4, 0], sizes = [4, 8], strides = [1, 1]} : vector<16x8xf32> to vector<4x8xf32>
    %33 = vector.extract_strided_slice %30 {offsets = [8, 0], sizes = [4, 8], strides = [1, 1]} : vector<16x8xf32> to vector<4x8xf32>
    %34 = vector.extract_strided_slice %30 {offsets = [12, 0], sizes = [4, 8], strides = [1, 1]} : vector<16x8xf32> to vector<4x8xf32>
    %35 = arith.mulf %32, %32 : vector<4x8xf32>
    %36 = arith.mulf %33, %33 : vector<4x8xf32>
    %37 = arith.addf %35, %36 : vector<4x8xf32>
    %38 = arith.mulf %34, %34 : vector<4x8xf32>
    %39 = arith.addf %37, %38 : vector<4x8xf32>
    %cst_24 = arith.constant 1.000000e-24 : f32
    %40 = vector.broadcast %cst_24 : f32 to vector<4x8xf32>
    %41 = arith.addf %39, %40 : vector<4x8xf32>
    %42 = math.sqrt %41 : vector<4x8xf32>
    %cst_25 = arith.constant 0.000000e+00 : f32
    %43 = vector.broadcast %cst_25 : f32 to vector<4x8xf32>
    %44 = arith.maximumf %42, %43 : vector<4x8xf32>
    %45 = math.absf %42 : vector<4x8xf32>
    %cst_26 = arith.constant 0.000000e+00 : f32
    %46 = vector.broadcast %cst_26 : f32 to vector<4x8xf32>
    %47 = arith.subf %46, %45 : vector<4x8xf32>
    %48 = math.exp %47 : vector<4x8xf32>
    %cst_27 = arith.constant 1.000000e+00 : f32
    %49 = vector.broadcast %cst_27 : f32 to vector<4x8xf32>
    %50 = arith.addf %49, %48 : vector<4x8xf32>
    %51 = math.log %50 : vector<4x8xf32>
    %52 = arith.addf %44, %51 : vector<4x8xf32>
    %cst_28 = arith.constant 2.000000e+00 : f32
    %53 = math.log %cst_28 : f32
    %54 = vector.broadcast %53 : f32 to vector<4x8xf32>
    %55 = arith.subf %52, %54 : vector<4x8xf32>
    %56 = math.rsqrt %41 : vector<4x8xf32>
    %57 = arith.mulf %55, %56 : vector<4x8xf32>
    %cst_29 = arith.constant 0.000000e+00 : f32
    %58 = vector.broadcast %cst_29 : f32 to vector<4x8xf32>
    %59 = arith.maximumf %31, %58 : vector<4x8xf32>
    %60 = math.absf %31 : vector<4x8xf32>
    %cst_30 = arith.constant 0.000000e+00 : f32
    %61 = vector.broadcast %cst_30 : f32 to vector<4x8xf32>
    %62 = arith.subf %61, %60 : vector<4x8xf32>
    %63 = math.exp %62 : vector<4x8xf32>
    %cst_31 = arith.constant 1.000000e+00 : f32
    %64 = vector.broadcast %cst_31 : f32 to vector<4x8xf32>
    %65 = arith.addf %64, %63 : vector<4x8xf32>
    %66 = math.log %65 : vector<4x8xf32>
    %67 = arith.addf %59, %66 : vector<4x8xf32>
    %cst_32 = arith.constant 2.000000e+00 : f32
    %68 = math.log %cst_32 : f32
    %69 = vector.broadcast %68 : f32 to vector<4x8xf32>
    %70 = arith.subf %67, %69 : vector<4x8xf32>
    %71 = arith.mulf %32, %57 : vector<4x8xf32>
    %72 = arith.mulf %33, %57 : vector<4x8xf32>
    %73 = arith.mulf %34, %57 : vector<4x8xf32>
    %74 = tpu.concatenate %70, %71, %72, %73 in 0 : vector<4x8xf32>, vector<4x8xf32>, vector<4x8xf32>, vector<4x8xf32> -> vector<16x8xf32>
    %c0_33 = arith.constant 0 : index
    %c0_34 = arith.constant 0 : index
    %75 = vector.load %arg4[%c0_33, %c0_34] : memref<8x128xf32, #tpu.memory_space<vmem>>, vector<8x128xf32>
    %cst_35 = arith.constant dense<0.000000e+00> : vector<16x128xf32>
    %76 = tpu.matmul %74, %75, %cst_35 {dimension_numbers = #tpu.dot_dimension_numbers<[1], [0], [0], [1], [0, 0, 1, 1], [], []>} : vector<16x8xf32>, vector<8x128xf32>, vector<16x128xf32> -> vector<16x128xf32>
    %77 = vector.extract_strided_slice %1 {offsets = [0, 0, 0], sizes = [1, 16, 128], strides = [1, 1, 1]} : vector<4x16x128xf32> to vector<1x16x128xf32>
    %78 = vector.shape_cast %77 : vector<1x16x128xf32> to vector<16x128xf32>
    %79 = vector.extract_strided_slice %76 {offsets = [0, 0], sizes = [4, 128], strides = [1, 1]} : vector<16x128xf32> to vector<4x128xf32>
    %80 = tpu.concatenate %79, %79, %79, %79 in 0 : vector<4x128xf32>, vector<4x128xf32>, vector<4x128xf32>, vector<4x128xf32> -> vector<16x128xf32>
    %81 = arith.mulf %78, %80 : vector<16x128xf32>
    %82 = vector.extract_strided_slice %1 {offsets = [1, 0, 0], sizes = [1, 16, 128], strides = [1, 1, 1]} : vector<4x16x128xf32> to vector<1x16x128xf32>
    %83 = vector.shape_cast %82 : vector<1x16x128xf32> to vector<16x128xf32>
    %84 = vector.extract_strided_slice %76 {offsets = [4, 0], sizes = [4, 128], strides = [1, 1]} : vector<16x128xf32> to vector<4x128xf32>
    %85 = tpu.concatenate %84, %84, %84, %84 in 0 : vector<4x128xf32>, vector<4x128xf32>, vector<4x128xf32>, vector<4x128xf32> -> vector<16x128xf32>
    %86 = arith.mulf %83, %85 : vector<16x128xf32>
    %87 = arith.addf %81, %86 : vector<16x128xf32>
    %88 = vector.extract_strided_slice %1 {offsets = [2, 0, 0], sizes = [1, 16, 128], strides = [1, 1, 1]} : vector<4x16x128xf32> to vector<1x16x128xf32>
    %89 = vector.shape_cast %88 : vector<1x16x128xf32> to vector<16x128xf32>
    %90 = vector.extract_strided_slice %76 {offsets = [8, 0], sizes = [4, 128], strides = [1, 1]} : vector<16x128xf32> to vector<4x128xf32>
    %91 = tpu.concatenate %90, %90, %90, %90 in 0 : vector<4x128xf32>, vector<4x128xf32>, vector<4x128xf32>, vector<4x128xf32> -> vector<16x128xf32>
    %92 = arith.mulf %89, %91 : vector<16x128xf32>
    %93 = arith.addf %87, %92 : vector<16x128xf32>
    %94 = vector.extract_strided_slice %1 {offsets = [3, 0, 0], sizes = [1, 16, 128], strides = [1, 1, 1]} : vector<4x16x128xf32> to vector<1x16x128xf32>
    %95 = vector.shape_cast %94 : vector<1x16x128xf32> to vector<16x128xf32>
    %96 = vector.extract_strided_slice %76 {offsets = [12, 0], sizes = [4, 128], strides = [1, 1]} : vector<16x128xf32> to vector<4x128xf32>
    %97 = tpu.concatenate %96, %96, %96, %96 in 0 : vector<4x128xf32>, vector<4x128xf32>, vector<4x128xf32>, vector<4x128xf32> -> vector<16x128xf32>
    %98 = arith.mulf %95, %97 : vector<16x128xf32>
    %99 = arith.addf %93, %98 : vector<16x128xf32>
    %100 = vector.extract_strided_slice %99 {offsets = [0, 0], sizes = [4, 128], strides = [1, 1]} : vector<16x128xf32> to vector<4x128xf32>
    %101 = vector.extract_strided_slice %99 {offsets = [4, 0], sizes = [4, 128], strides = [1, 1]} : vector<16x128xf32> to vector<4x128xf32>
    %102 = vector.extract_strided_slice %99 {offsets = [8, 0], sizes = [4, 128], strides = [1, 1]} : vector<16x128xf32> to vector<4x128xf32>
    %103 = vector.extract_strided_slice %99 {offsets = [12, 0], sizes = [4, 128], strides = [1, 1]} : vector<16x128xf32> to vector<4x128xf32>
    %104 = vector.extract_strided_slice %8 {offsets = [8, 0], sizes = [4, 128], strides = [1, 1]} : vector<40x128xf32> to vector<4x128xf32>
    %105 = vector.extract_strided_slice %8 {offsets = [12, 0], sizes = [4, 128], strides = [1, 1]} : vector<40x128xf32> to vector<4x128xf32>
    %106 = vector.extract_strided_slice %8 {offsets = [16, 0], sizes = [4, 128], strides = [1, 1]} : vector<40x128xf32> to vector<4x128xf32>
    %107 = vector.extract_strided_slice %8 {offsets = [20, 0], sizes = [4, 128], strides = [1, 1]} : vector<40x128xf32> to vector<4x128xf32>
    %108 = vector.extract_strided_slice %8 {offsets = [24, 0], sizes = [4, 128], strides = [1, 1]} : vector<40x128xf32> to vector<4x128xf32>
    %109 = vector.extract_strided_slice %8 {offsets = [28, 0], sizes = [4, 128], strides = [1, 1]} : vector<40x128xf32> to vector<4x128xf32>
    %110 = arith.mulf %104, %100 : vector<4x128xf32>
    %111 = arith.mulf %106, %102 : vector<4x128xf32>
    %112 = arith.addf %110, %111 : vector<4x128xf32>
    %113 = arith.mulf %108, %101 : vector<4x128xf32>
    %114 = arith.mulf %109, %103 : vector<4x128xf32>
    %115 = arith.subf %113, %114 : vector<4x128xf32>
    %116 = arith.mulf %105, %100 : vector<4x128xf32>
    %117 = arith.mulf %107, %102 : vector<4x128xf32>
    %118 = arith.addf %116, %117 : vector<4x128xf32>
    %119 = arith.mulf %109, %101 : vector<4x128xf32>
    %120 = arith.mulf %108, %103 : vector<4x128xf32>
    %121 = arith.addf %119, %120 : vector<4x128xf32>
    %122 = tpu.concatenate %112, %115, %118, %121 in 0 : vector<4x128xf32>, vector<4x128xf32>, vector<4x128xf32>, vector<4x128xf32> -> vector<16x128xf32>
    %123 = vector.extract_strided_slice %2 {offsets = [0, 0, 0], sizes = [1, 16, 128], strides = [1, 1, 1]} : vector<4x16x128xf32> to vector<1x16x128xf32>
    %124 = vector.shape_cast %123 : vector<1x16x128xf32> to vector<16x128xf32>
    %125 = vector.extract_strided_slice %122 {offsets = [0, 0], sizes = [4, 128], strides = [1, 1]} : vector<16x128xf32> to vector<4x128xf32>
    %126 = tpu.concatenate %125, %125, %125, %125 in 0 : vector<4x128xf32>, vector<4x128xf32>, vector<4x128xf32>, vector<4x128xf32> -> vector<16x128xf32>
    %127 = arith.mulf %124, %126 : vector<16x128xf32>
    %128 = vector.extract_strided_slice %2 {offsets = [1, 0, 0], sizes = [1, 16, 128], strides = [1, 1, 1]} : vector<4x16x128xf32> to vector<1x16x128xf32>
    %129 = vector.shape_cast %128 : vector<1x16x128xf32> to vector<16x128xf32>
    %130 = vector.extract_strided_slice %122 {offsets = [4, 0], sizes = [4, 128], strides = [1, 1]} : vector<16x128xf32> to vector<4x128xf32>
    %131 = tpu.concatenate %130, %130, %130, %130 in 0 : vector<4x128xf32>, vector<4x128xf32>, vector<4x128xf32>, vector<4x128xf32> -> vector<16x128xf32>
    %132 = arith.mulf %129, %131 : vector<16x128xf32>
    %133 = arith.addf %127, %132 : vector<16x128xf32>
    %134 = vector.extract_strided_slice %2 {offsets = [2, 0, 0], sizes = [1, 16, 128], strides = [1, 1, 1]} : vector<4x16x128xf32> to vector<1x16x128xf32>
    %135 = vector.shape_cast %134 : vector<1x16x128xf32> to vector<16x128xf32>
    %136 = vector.extract_strided_slice %122 {offsets = [8, 0], sizes = [4, 128], strides = [1, 1]} : vector<16x128xf32> to vector<4x128xf32>
    %137 = tpu.concatenate %136, %136, %136, %136 in 0 : vector<4x128xf32>, vector<4x128xf32>, vector<4x128xf32>, vector<4x128xf32> -> vector<16x128xf32>
    %138 = arith.mulf %135, %137 : vector<16x128xf32>
    %139 = arith.addf %133, %138 : vector<16x128xf32>
    %140 = vector.extract_strided_slice %2 {offsets = [3, 0, 0], sizes = [1, 16, 128], strides = [1, 1, 1]} : vector<4x16x128xf32> to vector<1x16x128xf32>
    %141 = vector.shape_cast %140 : vector<1x16x128xf32> to vector<16x128xf32>
    %142 = vector.extract_strided_slice %122 {offsets = [12, 0], sizes = [4, 128], strides = [1, 1]} : vector<16x128xf32> to vector<4x128xf32>
    %143 = tpu.concatenate %142, %142, %142, %142 in 0 : vector<4x128xf32>, vector<4x128xf32>, vector<4x128xf32>, vector<4x128xf32> -> vector<16x128xf32>
    %144 = arith.mulf %141, %143 : vector<16x128xf32>
    %145 = arith.addf %139, %144 : vector<16x128xf32>
    %c0_36 = arith.constant 0 : index
    %c0_37 = arith.constant 0 : index
    %146 = vector.load %arg5[%c0_36, %c0_37] : memref<128x8xf32, #tpu.memory_space<vmem>>, vector<128x8xf32>
    %cst_38 = arith.constant dense<0.000000e+00> : vector<16x8xf32>
    %147 = tpu.matmul %145, %146, %cst_38 {dimension_numbers = #tpu.dot_dimension_numbers<[1], [0], [0], [1], [0, 0, 1, 1], [], []>} : vector<16x128xf32>, vector<128x8xf32>, vector<16x8xf32> -> vector<16x8xf32>
    %c0_39 = arith.constant 0 : index
    %c0_40 = arith.constant 0 : index
    %148 = vector.load %arg11[%c0_39, %c0_40] : memref<16x16xf32, #tpu.memory_space<vmem>>, vector<16x16xf32>
    %cst_41 = arith.constant dense<0.000000e+00> : vector<16x8xf32>
    %149 = tpu.matmul %148, %147, %cst_41 {dimension_numbers = #tpu.dot_dimension_numbers<[1], [0], [0], [1], [0, 0, 1, 1], [], []>} : vector<16x16xf32>, vector<16x8xf32>, vector<16x8xf32> -> vector<16x8xf32>
    %150 = vector.extract_strided_slice %149 {offsets = [0, 0], sizes = [4, 8], strides = [1, 1]} : vector<16x8xf32> to vector<4x8xf32>
    %151 = vector.extract_strided_slice %149 {offsets = [4, 0], sizes = [4, 8], strides = [1, 1]} : vector<16x8xf32> to vector<4x8xf32>
    %152 = vector.extract_strided_slice %149 {offsets = [8, 0], sizes = [4, 8], strides = [1, 1]} : vector<16x8xf32> to vector<4x8xf32>
    %153 = vector.extract_strided_slice %149 {offsets = [12, 0], sizes = [4, 8], strides = [1, 1]} : vector<16x8xf32> to vector<4x8xf32>
    %154 = arith.mulf %151, %151 : vector<4x8xf32>
    %155 = arith.mulf %152, %152 : vector<4x8xf32>
    %156 = arith.addf %154, %155 : vector<4x8xf32>
    %157 = arith.mulf %153, %153 : vector<4x8xf32>
    %158 = arith.addf %156, %157 : vector<4x8xf32>
    %cst_42 = arith.constant 1.000000e-24 : f32
    %159 = vector.broadcast %cst_42 : f32 to vector<4x8xf32>
    %160 = arith.addf %158, %159 : vector<4x8xf32>
    %161 = math.sqrt %160 : vector<4x8xf32>
    %cst_43 = arith.constant 0.000000e+00 : f32
    %162 = vector.broadcast %cst_43 : f32 to vector<4x8xf32>
    %163 = arith.maximumf %161, %162 : vector<4x8xf32>
    %164 = math.absf %161 : vector<4x8xf32>
    %cst_44 = arith.constant 0.000000e+00 : f32
    %165 = vector.broadcast %cst_44 : f32 to vector<4x8xf32>
    %166 = arith.subf %165, %164 : vector<4x8xf32>
    %167 = math.exp %166 : vector<4x8xf32>
    %cst_45 = arith.constant 1.000000e+00 : f32
    %168 = vector.broadcast %cst_45 : f32 to vector<4x8xf32>
    %169 = arith.addf %168, %167 : vector<4x8xf32>
    %170 = math.log %169 : vector<4x8xf32>
    %171 = arith.addf %163, %170 : vector<4x8xf32>
    %cst_46 = arith.constant 2.000000e+00 : f32
    %172 = math.log %cst_46 : f32
    %173 = vector.broadcast %172 : f32 to vector<4x8xf32>
    %174 = arith.subf %171, %173 : vector<4x8xf32>
    %175 = math.rsqrt %160 : vector<4x8xf32>
    %176 = arith.mulf %174, %175 : vector<4x8xf32>
    %cst_47 = arith.constant 0.000000e+00 : f32
    %177 = vector.broadcast %cst_47 : f32 to vector<4x8xf32>
    %178 = arith.maximumf %150, %177 : vector<4x8xf32>
    %179 = math.absf %150 : vector<4x8xf32>
    %cst_48 = arith.constant 0.000000e+00 : f32
    %180 = vector.broadcast %cst_48 : f32 to vector<4x8xf32>
    %181 = arith.subf %180, %179 : vector<4x8xf32>
    %182 = math.exp %181 : vector<4x8xf32>
    %cst_49 = arith.constant 1.000000e+00 : f32
    %183 = vector.broadcast %cst_49 : f32 to vector<4x8xf32>
    %184 = arith.addf %183, %182 : vector<4x8xf32>
    %185 = math.log %184 : vector<4x8xf32>
    %186 = arith.addf %178, %185 : vector<4x8xf32>
    %cst_50 = arith.constant 2.000000e+00 : f32
    %187 = math.log %cst_50 : f32
    %188 = vector.broadcast %187 : f32 to vector<4x8xf32>
    %189 = arith.subf %186, %188 : vector<4x8xf32>
    %190 = arith.mulf %151, %176 : vector<4x8xf32>
    %191 = arith.mulf %152, %176 : vector<4x8xf32>
    %192 = arith.mulf %153, %176 : vector<4x8xf32>
    %193 = tpu.concatenate %189, %190, %191, %192 in 0 : vector<4x8xf32>, vector<4x8xf32>, vector<4x8xf32>, vector<4x8xf32> -> vector<16x8xf32>
    %c0_51 = arith.constant 0 : index
    %c0_52 = arith.constant 0 : index
    %194 = vector.load %arg4[%c0_51, %c0_52] : memref<8x128xf32, #tpu.memory_space<vmem>>, vector<8x128xf32>
    %cst_53 = arith.constant dense<0.000000e+00> : vector<16x128xf32>
    %195 = tpu.matmul %193, %194, %cst_53 {dimension_numbers = #tpu.dot_dimension_numbers<[1], [0], [0], [1], [0, 0, 1, 1], [], []>} : vector<16x8xf32>, vector<8x128xf32>, vector<16x128xf32> -> vector<16x128xf32>
    %196 = vector.extract_strided_slice %195 {offsets = [0, 0], sizes = [4, 128], strides = [1, 1]} : vector<16x128xf32> to vector<4x128xf32>
    %197 = vector.extract_strided_slice %195 {offsets = [4, 0], sizes = [4, 128], strides = [1, 1]} : vector<16x128xf32> to vector<4x128xf32>
    %198 = vector.extract_strided_slice %195 {offsets = [8, 0], sizes = [4, 128], strides = [1, 1]} : vector<16x128xf32> to vector<4x128xf32>
    %199 = vector.extract_strided_slice %195 {offsets = [12, 0], sizes = [4, 128], strides = [1, 1]} : vector<16x128xf32> to vector<4x128xf32>
    %200 = vector.extract_strided_slice %1 {offsets = [0, 0, 0], sizes = [1, 4, 128], strides = [1, 1, 1]} : vector<4x16x128xf32> to vector<1x4x128xf32>
    %201 = vector.shape_cast %200 : vector<1x4x128xf32> to vector<4x128xf32>
    %202 = arith.mulf %201, %196 : vector<4x128xf32>
    %203 = vector.extract_strided_slice %1 {offsets = [1, 0, 0], sizes = [1, 4, 128], strides = [1, 1, 1]} : vector<4x16x128xf32> to vector<1x4x128xf32>
    %204 = vector.shape_cast %203 : vector<1x4x128xf32> to vector<4x128xf32>
    %205 = arith.mulf %204, %197 : vector<4x128xf32>
    %206 = arith.addf %202, %205 : vector<4x128xf32>
    %207 = vector.extract_strided_slice %1 {offsets = [2, 0, 0], sizes = [1, 4, 128], strides = [1, 1, 1]} : vector<4x16x128xf32> to vector<1x4x128xf32>
    %208 = vector.shape_cast %207 : vector<1x4x128xf32> to vector<4x128xf32>
    %209 = arith.mulf %208, %198 : vector<4x128xf32>
    %210 = arith.addf %206, %209 : vector<4x128xf32>
    %211 = vector.extract_strided_slice %1 {offsets = [3, 0, 0], sizes = [1, 4, 128], strides = [1, 1, 1]} : vector<4x16x128xf32> to vector<1x4x128xf32>
    %212 = vector.shape_cast %211 : vector<1x4x128xf32> to vector<4x128xf32>
    %213 = arith.mulf %212, %199 : vector<4x128xf32>
    %214 = arith.addf %210, %213 : vector<4x128xf32>
    %215 = vector.extract_strided_slice %1 {offsets = [0, 8, 0], sizes = [1, 4, 128], strides = [1, 1, 1]} : vector<4x16x128xf32> to vector<1x4x128xf32>
    %216 = vector.shape_cast %215 : vector<1x4x128xf32> to vector<4x128xf32>
    %217 = arith.mulf %216, %196 : vector<4x128xf32>
    %218 = vector.extract_strided_slice %1 {offsets = [1, 8, 0], sizes = [1, 4, 128], strides = [1, 1, 1]} : vector<4x16x128xf32> to vector<1x4x128xf32>
    %219 = vector.shape_cast %218 : vector<1x4x128xf32> to vector<4x128xf32>
    %220 = arith.mulf %219, %197 : vector<4x128xf32>
    %221 = arith.addf %217, %220 : vector<4x128xf32>
    %222 = vector.extract_strided_slice %1 {offsets = [2, 8, 0], sizes = [1, 4, 128], strides = [1, 1, 1]} : vector<4x16x128xf32> to vector<1x4x128xf32>
    %223 = vector.shape_cast %222 : vector<1x4x128xf32> to vector<4x128xf32>
    %224 = arith.mulf %223, %198 : vector<4x128xf32>
    %225 = arith.addf %221, %224 : vector<4x128xf32>
    %226 = vector.extract_strided_slice %1 {offsets = [3, 8, 0], sizes = [1, 4, 128], strides = [1, 1, 1]} : vector<4x16x128xf32> to vector<1x4x128xf32>
    %227 = vector.shape_cast %226 : vector<1x4x128xf32> to vector<4x128xf32>
    %228 = arith.mulf %227, %199 : vector<4x128xf32>
    %229 = arith.addf %225, %228 : vector<4x128xf32>
    %230 = vector.extract_strided_slice %8 {offsets = [32, 0], sizes = [4, 128], strides = [1, 1]} : vector<40x128xf32> to vector<4x128xf32>
    %231 = arith.mulf %230, %214 : vector<4x128xf32>
    %232 = vector.extract_strided_slice %8 {offsets = [36, 0], sizes = [4, 128], strides = [1, 1]} : vector<40x128xf32> to vector<4x128xf32>
    %233 = arith.mulf %232, %229 : vector<4x128xf32>
    %234 = arith.addf %231, %233 : vector<4x128xf32>
    %235 = vector.broadcast %0 : vector<1x128xf32> to vector<4x128xf32>
    %236 = arith.mulf %234, %235 : vector<4x128xf32>
    %c0_54 = arith.constant 0 : index
    %c0_55 = arith.constant 0 : index
    %237 = vector.load %arg5[%c0_54, %c0_55] : memref<128x8xf32, #tpu.memory_space<vmem>>, vector<128x8xf32>
    %cst_56 = arith.constant dense<0.000000e+00> : vector<4x8xf32>
    %238 = tpu.matmul %236, %237, %cst_56 {dimension_numbers = #tpu.dot_dimension_numbers<[1], [0], [0], [1], [0, 0, 1, 1], [], []>} : vector<4x128xf32>, vector<128x8xf32>, vector<4x8xf32> -> vector<4x8xf32>
    %c0_57 = arith.constant 0 : index
    %c0_58 = arith.constant 0 : index
    %239 = vector.load %arg12[%c0_57, %c0_58] : memref<4x4xf32, #tpu.memory_space<vmem>>, vector<4x4xf32>
    %cst_59 = arith.constant dense<0.000000e+00> : vector<4x8xf32>
    %240 = tpu.matmul %239, %238, %cst_59 {dimension_numbers = #tpu.dot_dimension_numbers<[1], [0], [0], [1], [0, 0, 1, 1], [], []>} : vector<4x4xf32>, vector<4x8xf32>, vector<4x8xf32> -> vector<4x8xf32>
    %cst_60 = arith.constant 0.000000e+00 : f32
    %241 = vector.broadcast %cst_60 : f32 to vector<4x8xf32>
    %242 = arith.subf %241, %240 : vector<4x8xf32>
    %243 = math.exp %242 : vector<4x8xf32>
    %cst_61 = arith.constant 1.000000e+00 : f32
    %244 = vector.broadcast %cst_61 : f32 to vector<4x8xf32>
    %245 = arith.addf %244, %243 : vector<4x8xf32>
    %cst_62 = arith.constant 1.000000e+00 : f32
    %246 = vector.broadcast %cst_62 : f32 to vector<4x8xf32>
    %247 = arith.divf %246, %245 : vector<4x8xf32>
    %248 = arith.mulf %240, %247 : vector<4x8xf32>
    %c0_63 = arith.constant 0 : index
    %c0_64 = arith.constant 0 : index
    %249 = vector.load %arg6[%c0_63, %c0_64] : memref<8x2xf32, #tpu.memory_space<vmem>>, vector<8x2xf32>
    %cst_65 = arith.constant dense<0.000000e+00> : vector<4x2xf32>
    %250 = tpu.matmul %248, %249, %cst_65 {dimension_numbers = #tpu.dot_dimension_numbers<[1], [0], [0], [1], [0, 0, 1, 1], [], []>} : vector<4x8xf32>, vector<8x2xf32>, vector<4x2xf32> -> vector<4x2xf32>
    %c0_66 = arith.constant 0 : index
    %c0_67 = arith.constant 0 : index
    %251 = vector.load %arg13[%c0_66, %c0_67] : memref<8x4xf32, #tpu.memory_space<vmem>>, vector<8x4xf32>
    %cst_68 = arith.constant dense<0.000000e+00> : vector<8x2xf32>
    %252 = tpu.matmul %251, %250, %cst_68 {dimension_numbers = #tpu.dot_dimension_numbers<[1], [0], [0], [1], [0, 0, 1, 1], [], []>} : vector<8x4xf32>, vector<4x2xf32>, vector<8x2xf32> -> vector<8x2xf32>
    %c0_69 = arith.constant 0 : index
    %c0_70 = arith.constant 0 : index
    %253 = vector.load %arg14[%c0_69, %c0_70] : memref<8x1xf32, #tpu.memory_space<vmem>>, vector<8x1xf32>
    %254 = vector.broadcast %253 : vector<8x1xf32> to vector<8x2xf32>
    %255 = arith.addf %252, %254 : vector<8x2xf32>
    %cst_71 = arith.constant dense<0xFF800000> : vector<2xf32>
    %256 = vector.multi_reduction <maximumf>, %255, %cst_71 [0] : vector<8x2xf32> to vector<2xf32>
    %257 = vector.shape_cast %256 : vector<2xf32> to vector<1x2xf32>
    %258 = vector.broadcast %257 : vector<1x2xf32> to vector<8x2xf32>
    %259 = arith.subf %255, %258 : vector<8x2xf32>
    %260 = math.exp %259 : vector<8x2xf32>
    %cst_72 = arith.constant dense<0.000000e+00> : vector<2xf32>
    %261 = vector.multi_reduction <add>, %260, %cst_72 [0] : vector<8x2xf32> to vector<2xf32>
    %262 = vector.shape_cast %261 : vector<2xf32> to vector<1x2xf32>
    %263 = vector.broadcast %262 : vector<1x2xf32> to vector<8x2xf32>
    %264 = arith.divf %260, %263 : vector<8x2xf32>
    %c0_73 = arith.constant 0 : index
    %c0_74 = arith.constant 0 : index
    %265 = vector.load %arg15[%c0_73, %c0_74] : memref<8x2xf32, #tpu.memory_space<vmem>>, vector<8x2xf32>
    tpu.vector_store %arg15[%c0_73, %c0_74], %264 {strides = array<i32>} : memref<8x2xf32, #tpu.memory_space<vmem>>, vector<8x2xf32>,
    return
  }
}

</mosaic_0001>

<bundles_post_ra>
// kernel: tpu_custom_call.1
= control target key start
LH: loop header
LB: loop body
LE: loop exit
PB: predicated region body
PF: predicated region fallthrough
CT: control target
= control target key end

     0   :  { %vm120_vm0 = vcmask 1041408   ;;  %v1755_v0 = vmov 0.0|0.0   ;;  %vm1756_vm1 = vmmov 1   ;;  %v1757_v4 = vmov 0.0   ;;  %s2208_s0 = inlined_call_operand.vmem [shape: f32[10,128], index: 0, kind: input, shape index: {}]   ;;  %s2209_s4 = inlined_call_operand.vmem [shape: f32[8,128], index: 4, kind: input, shape index: {}]   ;;  %s2210_s7 = inlined_call_operand.vmem [shape: f32[1,8], index: 7, kind: input, shape index: {}]   ;;  %s2211_s8 = inlined_call_operand.vmem [shape: f32[40,10], index: 8, kind: input, shape index: {}]   ;;  %s2212_s9 = inlined_call_operand.vmem [shape: f32[40,1], index: 9, kind: input, shape index: {}]   ;;  %s2213_s5 = inlined_call_operand.vmem [shape: f32[128,8], index: 5, kind: input, shape index: {}]   ;;  %s2214_s3 = inlined_call_operand.vmem [shape: f32[4,16,128], index: 3, kind: input, shape index: {}]   ;;  %s2215_s10 = inlined_call_operand.vmem [shape: f32[16,16], index: 10, kind: input, shape index: {}]   ;;  %s2216_s14 = inlined_call_operand.vmem [shape: f32[8,1], index: 14, kind: input, shape index: {}]   ;;  %s2217_s2 = inlined_call_operand.vmem [shape: f32[4,16,128], index: 2, kind: input, shape index: {}]   ;;  %s2218_s11 = inlined_call_operand.vmem [shape: f32[16,16], index: 11, kind: input, shape index: {}]   ;;  %s2219_s1 = inlined_call_operand.vmem [shape: f32[1,128], index: 1, kind: input, shape index: {}]   ;;  %s2220_s12 = inlined_call_operand.vmem [shape: f32[4,4], index: 12, kind: input, shape index: {}]   ;;  %s2221_s6 = inlined_call_operand.vmem [shape: f32[8,2], index: 6, kind: input, shape index: {}]   ;;  %s2222_s13 = inlined_call_operand.vmem [shape: f32[8,4], index: 13, kind: input, shape index: {}]   ;;  %s2223_s15 = inlined_call_operand.vmem [shape: f32[8,2], index: 15, kind: output, shape index: {}]  }
   0x1   :  { %1620 = vmatprep.subr.bf16.mxu0 %v1755_v0  ;;  %v72_v1 = vld [vmem:[%s2208_s0] sm:$0xff]  ;;  %v73_v2 = vld [vmem:[%s2208_s0 + $0x8] sm:$0x3]  ;;  %vm1847_vm2 = vmpackc.low %vm120_vm0, %vm1756_vm1  ;;  %1471 = vmatprep.subr.mxu1 %v1757_v4  ;;  %vm216_vm3 = vcmask 64512   ;;  %vm1758_vm4 = vmmov 0   ;;  %v1759_v8 = vmov 0   ;;  %v290_v41 = vlaneseq }
   0x2   :  { %v1621_v5 = vpack.c.bf16 %v73_v2, %v72_v1  ;;  %v1855_v6 = vld [vmem:[%s2209_s4] sm:$0xff]  ;;  %1473 = vmatprep.mubr.msk.f32.mxu1 %vm1758_vm4, %v1757_v4  ;;  %1456 = vmatprep.mubr.msk.f32.mxu0 %vm1758_vm4, %v1757_v4  ;;  %vm104_vm5 = vcmask 80896   ;;  %v308_v12 = vld [vmem:[%s2213_s5 + $0x8] sm:$0xff]  ;;  %v77_v13 = vld [vmem:[%s2212_s9 + $0x18] sm:$0xff]  ;;  %vm298_vm6 = vcmask 1043456   ;;  %vm400_vm7 = vcmask 130048  }
   0x3   :  { %v214_v7 = vld [vmem:[%s2210_s7] sm:$0x1]  ;;  %1472 = vmatpush3.msra.mxu1 %v1855_v6  ;;  %1725 = vset.pattern.permute.xlu0 %v1759_v8  ;;  %v309_v15 = vld [vmem:[%s2213_s5 + $0x10] sm:$0xff]  ;;  %v310_v16 = vld [vmem:[%s2213_s5 + $0x18] sm:$0xff]  ;;  %v291_v42 = vshrl.u32 %v290_v41, 7  ;;  %vm1079_vm12 = vcmask 31744  }
   0x4   :  { %1623 = vmatpush3.bf16.msk.msra.mxu0 %vm1847_vm2, %v1621_v5  ;;  %1474 = vmatmul.mubr.msk.f32.vlgmr.msra.gmra.mrb[0].mxu1 %vm216_vm3, %v214_v7  ;;  %v67_v9 = vld [vmem:[%s2211_s8] sm:$0xff]  ;;  %v1892_v17 = vpack.c.bf16 %v310_v16, %v309_v15  ;;  %v312_v19 = vld [vmem:[%s2213_s5 + $0x28] sm:$0xff]  ;;  %v313_v23 = vld [vmem:[%s2213_s5 + $0x30] sm:$0xff]  ;;  %vm1320_vm13 = vcmask 15360  }
   0x5   :  { %v74_v10 = vld [vmem:[%s2212_s9] sm:$0xff]  ;;  %1726 = vset.pattern.permute.xlu1 %v1759_v8  ;;  %v68_v20 = vld [vmem:[%s2211_s8 + $0x8] sm:$0xff]  ;;  %v314_v24 = vld [vmem:[%s2213_s5 + $0x38] sm:$0xff]  ;;  %v292_v43 = vsub.s32 0, %v291_v42 }
   0x6   :  { %81 = vperm.xlu0 %1725, %v74_v10   ;;  %v307_v11 = vld [vmem:[%s2213_s5] sm:$0xff]  ;;  %v69_v25 = vld [vmem:[%s2211_s8 + $0x10] sm:$0xff]  ;;  %v1927_v26 = vpack.c.bf16 %v314_v24, %v313_v23  ;;  %v316_v28 = vld [vmem:[%s2213_s5 + $0x48] sm:$0xff] }
   0x7   :  { %v1883_v14 = vpack.c.bf16 %v308_v12, %v307_v11  ;;  %1457 = vmatmul.mubr.msk.f32.vlgmr.msra.gmra.mrb[0].mxu0 %vm104_vm5, %v67_v9  ;;  %v311_v18 = vld [vmem:[%s2213_s5 + $0x20] sm:$0xff]  ;;  %v70_v29 = vld [vmem:[%s2211_s8 + $0x18] sm:$0xff]  ;;  %v317_v32 = vld [vmem:[%s2213_s5 + $0x50] sm:$0xff] }
   0x8   :  { %1459 = vmatprep.mubr.msk.f32.mxu0 %vm1758_vm4, %v1757_v4  ;;  %v78_v21 = vld [vmem:[%s2212_s9 + $0x20] sm:$0xff]  ;;  %v1911_v22 = vpack.c.bf16 %v312_v19, %v311_v18  ;;  %v318_v33 = vld [vmem:[%s2213_s5 + $0x58] sm:$0xff]  ;;  %v320_v36 = vld [vmem:[%s2213_s5 + $0x68] sm:$0xff] }
   0x9   :  { %1625 = vmatprep.subr.bf16.mxu1 %v1883_v14  ;;  %v315_v27 = vld [vmem:[%s2213_s5 + $0x40] sm:$0xff]  ;;  %v1961_v34 = vpack.c.bf16 %v318_v33, %v317_v32  ;;  %v321_v38 = vld [vmem:[%s2213_s5 + $0x70] sm:$0xff]  ;;  %v322_v39 = vld [vmem:[%s2213_s5 + $0x78] sm:$0xff] }
   0xa   :  { %96 = vperm.xlu0 %1725, %v77_v13   ;;  %1627 = vmatpush3.bf16.msra.mxu1 %v1883_v14  ;;  %v1943_v30 = vpack.c.bf16 %v316_v28, %v315_v27  ;;  %v71_v31 = vld [vmem:[%s2211_s8 + $0x20] sm:$0xff]  ;;  %v1981_v40 = vpack.c.bf16 %v322_v39, %v321_v38  ;;  %v1995_v56 = vld [vmem:[%s2214_s3 + $0x8] sm:$0xff]  ;;  %v76_v15 = vld [vmem:[%s2212_s9 + $0x10] sm:$0xff] }
   0xb   :  { %1629 = vmatprep.subr.bf16.mxu1 %v1892_v17  ;;  %1460 = vmatmul.mubr.msk.f32.gmra.mrb[2].mxu0 %vm104_vm5, %v68_v20  ;;  %v319_v35 = vld [vmem:[%s2213_s5 + $0x60] sm:$0xff]  ;;  %v2005_v58 = vld [vmem:[%s2214_s3 + $0x28] sm:$0xff] }
   0xc   :  { %1462 = vmatprep.mubr.msk.f32.mxu0 %vm1758_vm4, %v1757_v4  ;;  %v1971_v37 = vpack.c.bf16 %v320_v36, %v319_v35  ;;  %v1990_v53 = vld [vmem:[%s2214_s3] sm:$0xff]  ;;  %v75_v13 = vld [vmem:[%s2212_s9 + $0x8] sm:$0xff] }
   0xd   :  { %v2000_v57 = vld [vmem:[%s2214_s3 + $0x20] sm:$0xff]  ;;  %86 = vperm.xlu1 %1726, %v75_v13   ;;  %v399_v20 = vld [vmem:[%s2215_s10 + $0x8] sm:$0xff] }
   0xe   :  { %101 = vperm.xlu0 %1725, %v78_v21   ;;  %1631 = vmatpush3.bf16.msra.mxu1 %v1892_v17  ;;  %v398_v12 = vld [vmem:[%s2215_s10] sm:$0xff] }
   0xf   :  { %1633 = vmatprep.subr.bf16.mxu1 %v1911_v22  ;;  %1463 = vmatmul.mubr.msk.f32.gmra.mrb[4].mxu0 %vm104_vm5, %v69_v25  ;;  %v1238_v21 = vld [vmem:[%s2216_s14] sm:$0xff] }
  0x10   :  { %1465 = vmatprep.mubr.msk.f32.mxu0 %vm1758_vm4, %v1757_v4 }
  0x11   :  { %91 = vperm.xlu1 %1726, %v76_v15  }
  0x12   :  { %1635 = vmatpush3.bf16.msra.mxu1 %v1911_v22 }
  0x13   :  { %1637 = vmatprep.subr.bf16.mxu1 %v1927_v26  ;;  %1466 = vmatmul.mubr.msk.f32.gmra.mrb[6].mxu0 %vm104_vm5, %v70_v29 }
  0x14   :  { %1468 = vmatprep.mubr.msk.f32.mxu0 %vm1758_vm4, %v1757_v4 }
  0x15   :  { %1241 = vperm.xlu1 %1726, %v1238_v21  }
  0x16   :  { %1639 = vmatpush3.bf16.msra.mxu1 %v1927_v26 }
  0x17   :  { %1641 = vmatprep.subr.bf16.mxu1 %v1943_v30  ;;  %1469 = vmatmul.mubr.msk.f32.gmra.mrb[8].mxu0 %vm104_vm5, %v71_v31 }
  0x18   :  { %1515 = vmatprep.mubr.msk.f32.mxu0 %vm400_vm7, %v398_v12 }
  0x1a   :  { %1643 = vmatpush3.bf16.msra.mxu1 %v1943_v30 }
  0x1b   :  { %1645 = vmatprep.subr.bf16.mxu1 %v1961_v34 }
  0x1e   :  { %1647 = vmatpush3.bf16.msra.mxu1 %v1961_v34 }
  0x1f   :  { %1649 = vmatprep.subr.bf16.mxu1 %v1971_v37 }
  0x22   :  { %1651 = vmatpush3.bf16.msra.mxu1 %v1971_v37 }
  0x23   :  { %1653 = vmatprep.subr.bf16.mxu1 %v1981_v40 }
  0x26   :  { %1655 = vmatpush3.bf16.msra.mxu1 %v1981_v40 }
  0x85   :  { %v82_v47 = vpop.permute.xlu0 %81 }
  0xd7   :  { %v286_v44 = vpop.f32.mrb[0].mxu1 }
  0xd8   :  { %v1475_v45 = vpop.f32.mrb[1].mxu1  ;;  %v293_v46 = vrot.slane %v286_v44, %v292_v43 }
  0xda   :  { %v190_v48 = vpop.f32.mrb[0].mxu0 }
  0xdb   :  { %v191_v49 = vadd.f32 %v190_v48, %v82_v47  ;;  %v1458_v50 = vpop.f32.mrb[1].mxu0 }
  0xdd   :  { %v294_v51 = vmul.f32 %v293_v46, %v191_v49 }
  0xde   :  { %v1985_v52 = vpop.f32.mrb[2].mxu0 }
  0xdf   :  { %v296_v54 = vrot.slane %v294_v51, 4  ;;  %v1461_v55 = vpop.f32.mrb[3].mxu0 }
  0xe1   :  { %v299_v59 = vsel %vm298_vm6, %v294_v51, %v296_v54  ;;  %v302_v60 = vsel %vm298_vm6, %v296_v54, %v294_v51 }
  0xe2   :  { %v2009_v61 = vpop.f32.mrb[4].mxu0  ;;  %v300_v62 = vmul.f32 %v299_v59, %v1990_v53  ;;  %v301_v63 = vmul.f32 %v299_v59, %v1995_v56  ;;  %v303_v1 = vmul.f32 %v302_v60, %v2000_v57  ;;  %v304_v2 = vmul.f32 %v302_v60, %v2005_v58 }
  0xe3   :  { %v1464_v3 = vpop.f32.mrb[5].mxu0 }
  0xe4   :  { %v305_v5 = vadd.f32 %v303_v1, %v300_v62  ;;  %v306_v7 = vadd.f32 %v304_v2, %v301_v63 }
  0xe6   :  { %v2015_v8 = vpop.f32.mrb[6].mxu0  ;;  %1508 = vmatprep.mubr.f32.mxu1 %v305_v5 }
  0xe7   :  { %1509 = vmatmul.mubr.f32.vlgmr.msra.gmra.mrb[2].mxu1 %v306_v7  ;;  %v1467_v9 = vpop.f32.mrb[7].mxu0 }
  0xea   :  { %v2017_v10 = vpop.f32.mrb[8].mxu0 }
  0xeb   :  { %v1470_v11 = vpop.f32.mrb[9].mxu0 }
 0x1ba   :  { %v1510_v16 = vpop.f32.mrb[2].mxu1 }
 0x1bb   :  { %v389_v18 = vpop.f32.mrb[3].mxu1 }
 0x1bc   :  { %v1656_v19 = vpack.c.bf16 %v1510_v16, %v389_v18 }
 0x1be   :  { %1657 = vmatprep.subr.bf16.mxu0 %v1656_v19 }
 0x1bf   :  { %1659 = vmatpush3.bf16.msra.mxu0 %v1656_v19 }
 0x1c0   :  { %1518 = vmatprep.subr.mxu0 %v1855_v6 }
 0x1c2   :  { %1516 = vmatmul.mubr.msk.f32.vlgmr.msra.gmra.mrb[10].mxu0 %vm400_vm7, %v399_v20  ;;  %v2062_v20 = vld [vmem:[%s2217_s2] sm:$0xff] }
 0x1c3   :  { %1519 = vmatpush3.msra.mxu0 %v1855_v6 }
 0x1c4   :  { %1661 = vmatprep.subr.bf16.mxu0 %v1883_v14 }
 0x295   :  { %v1517_v23 = vpop.f32.mrb[10].mxu0 }
 0x296   :  { %v483_v24 = vmul.f32 %v1517_v23, %v1517_v23  ;;  %v473_v25 = vpop.f32.mrb[11].mxu0 }
 0x297   :  { %v482_v27 = vmul.f32 %v473_v25, %v473_v25  ;;  %v510_v33 = vand.u32 2147483647, %v473_v25  ;;  %v509_v63 = vmax.f32 %v473_v25, 0.0 }
 0x298   :  { %v485_v28 = vrot.slane %v483_v24, 4 }
 0x299   :  { %v511_v35 = vsub.f32 0.0, %v510_v33 }
 0x29a   :  { %v487_v29 = vadd.f32 %v485_v28, %v482_v27  ;;  %v2077_v27 = vld [vmem:[%s2217_s2 + $0x18] sm:$0xff]  ;;  %v2082_v28 = vld [vmem:[%s2217_s2 + $0x20] sm:$0xff] }
 0x29b   :  { %v512_v39 = vmul.f32 1.442695, %v511_v35 }
 0x29c   :  { %v488_v31 = vadd.f32 %v487_v29, %v483_v24  ;;  %v2067_v24 = vld [vmem:[%s2217_s2 + $0x8] sm:$0xff] }
 0x29d   :  { %v2087_v29 = vld [vmem:[%s2217_s2 + $0x28] sm:$0xff] }
 0x29e   :  { %v489_v32 = vadd.f32 1e-24, %v488_v31 }
 0x2a0   :  { %1727 = vrsqrt.f32 %v489_v32  ;;  %vm492_vm8 = vcmp.eq.f32.partialorder %v489_v32, inf  ;;  %v495_v41 = vand.u32 2147483648, %v489_v32  ;;  %vm494_vm9 = vcmp.eq.f32.partialorder %v489_v32, 0.0 }
 0x2a1   :  { %1729 = vpow2.f32 %v512_v39 }
 0x2aa   :  { %v1728_v36 = vpop.eup %1727 }
 0x2ab   :  { %v491_v38 = vmul.f32 %v1728_v36, %v489_v32  ;;  %v1730_v47 = vpop.eup %1729 }
 0x2ac   :  { %v514_v48 = vadd.f32 1.0, %v1730_v47 }
 0x2ad   :  { %v493_v42 = vsel %vm492_vm8, %v489_v32, %v491_v38 }
 0x2ae   :  { %v496_v43 = vsel %vm494_vm9, %v495_v41, %v493_v42  ;;  %v2099_v41 = vld [vmem:[%s2217_s2 + $0x30] sm:$0xff]  ;;  %v2104_v42 = vld [vmem:[%s2217_s2 + $0x38] sm:$0xff] }
 0x2af   :  { %v498_v44 = vand.u32 2147483647, %v496_v43  ;;  %v497_v55 = vmax.f32 %v496_v43, 0.0 }
 0x2b1   :  { %v499_v45 = vsub.f32 0.0, %v498_v44 }
 0x2b3   :  { %v500_v46 = vmul.f32 1.442695, %v499_v45 }
 0x2b5   :  { %1731 = vpow2.f32 %v500_v46 }
 0x2b6   :  { %1733 = vlog2.f32 %v514_v48 }
 0x2bf   :  { %v1732_v49 = vpop.eup %1731 }
 0x2c0   :  { %v502_v50 = vadd.f32 1.0, %v1732_v49  ;;  %v1734_v51 = vpop.eup %1733  ;;  %v97_v49 = vpop.permute.xlu0 %96 }
 0x2c1   :  { %v516_v60 = vmul.f32 0.6931472, %v1734_v51 }
 0x2c2   :  { %1735 = vlog2.f32 %v502_v50 }
 0x2c3   :  { %v517_v2 = vadd.f32 %v516_v60, %v509_v63 }
 0x2c5   :  { %v1355_v7 = vadd.f32 -0.6931472, %v517_v2 }
 0x2cc   :  { %v1736_v54 = vpop.eup %1735 }
 0x2cd   :  { %v504_v59 = vmul.f32 0.6931472, %v1736_v54 }
 0x2cf   :  { %v505_v62 = vadd.f32 %v504_v59, %v497_v55  ;;  %v206_v59 = vadd.f32 %v2015_v8, %v97_v49  ;;  %v65_v49 = vld [vmem:[%s2214_s3 + $0x30] sm:$0xff] }
 0x2d1   :  { %v1354_v1 = vadd.f32 -0.6931472, %v505_v62 }
 0x2d3   :  { %v508_v3 = vmul.f32 %v1728_v36, %v1354_v1 }
 0x2d5   :  { %v519_v5 = vmul.f32 %v508_v3, %v473_v25  ;;  %v521_v9 = vrot.slane %v508_v3, 4  ;;  %v524_v11 = vmul.f32 %v1517_v23, %v508_v3  ;;  %v2072_v25 = vld [vmem:[%s2217_s2 + $0x10] sm:$0xff] }
 0x2d7   :  { %v525_v12 = vsel %vm298_vm6, %v1355_v7, %v519_v5  ;;  %v523_v13 = vmul.f32 %v1517_v23, %v521_v9  ;;  %v87_v23 = vpop.permute.xlu1 %86 }
 0x2d8   :  { %1520 = vmatprep.mubr.msk.f32.mxu0 %vm216_vm3, %v525_v12  ;;  %v196_v60 = vadd.f32 %v1985_v52, %v87_v23 }
 0x2d9   :  { %v526_v15 = vsel %vm298_vm6, %v523_v13, %v524_v11 }
 0x2da   :  { %1521 = vmatmul.mubr.msk.f32.vlgmr.msra.gmra.mrb[12].mxu0 %vm216_vm3, %v526_v15 }
 0x2db   :  { %1663 = vmatpush3.bf16.msra.mxu0 %v1883_v14  ;;  %v92_v48 = vpop.permute.xlu1 %91 }
 0x2dc   :  { %1665 = vmatprep.subr.bf16.mxu0 %v1892_v17  ;;  %v201_v62 = vadd.f32 %v2009_v61, %v92_v48 }
 0x2df   :  { %1667 = vmatpush3.bf16.msra.mxu0 %v1892_v17 }
 0x2e0   :  { %1669 = vmatprep.subr.bf16.mxu0 %v1911_v22 }
 0x2e3   :  { %1671 = vmatpush3.bf16.msra.mxu0 %v1911_v22 }
 0x2e4   :  { %1673 = vmatprep.subr.bf16.mxu0 %v1927_v26 }
 0x2e7   :  { %1675 = vmatpush3.bf16.msra.mxu0 %v1927_v26 }
 0x2e8   :  { %1677 = vmatprep.subr.bf16.mxu0 %v1943_v30 }
 0x2eb   :  { %1679 = vmatpush3.bf16.msra.mxu0 %v1943_v30 }
 0x2ec   :  { %1681 = vmatprep.subr.bf16.mxu0 %v1961_v34 }
 0x2ef   :  { %1683 = vmatpush3.bf16.msra.mxu0 %v1961_v34 }
 0x2f0   :  { %1685 = vmatprep.subr.bf16.mxu0 %v1971_v37 }
 0x2f3   :  { %1687 = vmatpush3.bf16.msra.mxu0 %v1971_v37 }
 0x2f4   :  { %1689 = vmatprep.subr.bf16.mxu0 %v1981_v40 }
 0x2f7   :  { %1691 = vmatpush3.bf16.msra.mxu0 %v1981_v40 }
 0x2f8   :  { %1605 = vmatprep.subr.mxu0 %v1757_v4 }
 0x3ad   :  { %v1522_v16 = vpop.f32.mrb[12].mxu0 }
 0x3ae   :  { %v620_v18 = vrot.slane %v1522_v16, 4  ;;  %v599_v19 = vpop.f32.mrb[13].mxu0 }
 0x3af   :  { %v609_v21 = vrot.slane %v599_v19, 4 }
 0x3b0   :  { %v622_v31 = vsel %vm298_vm6, %v1522_v16, %v620_v18  ;;  %v627_v43 = vsel %vm298_vm6, %v620_v18, %v1522_v16 }
 0x3b1   :  { %v611_v32 = vsel %vm298_vm6, %v599_v19, %v609_v21  ;;  %v614_v33 = vsel %vm298_vm6, %v609_v21, %v599_v19  ;;  %v623_v44 = vmul.f32 %v622_v31, %v2082_v28  ;;  %v624_v45 = vmul.f32 %v622_v31, %v2087_v29 }
 0x3b2   :  { %v612_v35 = vmul.f32 %v611_v32, %v2062_v20  ;;  %v613_v36 = vmul.f32 %v611_v32, %v2067_v24  ;;  %v615_v38 = vmul.f32 %v614_v33, %v2072_v25  ;;  %v616_v39 = vmul.f32 %v614_v33, %v2077_v27  ;;  %v61_v33 = vld [vmem:[%s2214_s3 + $0x10] sm:$0xff] }
 0x3b3   :  { %v628_v50 = vmul.f32 %v627_v43, %v2099_v41  ;;  %v629_v51 = vmul.f32 %v627_v43, %v2104_v42 }
 0x3b4   :  { %v617_v46 = vadd.f32 %v615_v38, %v612_v35  ;;  %v618_v47 = vadd.f32 %v616_v39, %v613_v36  ;;  %v62_v35 = vld [vmem:[%s2214_s3 + $0x18] sm:$0xff] }
 0x3b6   :  { %v625_v54 = vadd.f32 %v623_v44, %v617_v46  ;;  %v626_v55 = vadd.f32 %v624_v45, %v618_v47 }
 0x3b8   :  { %v630_v63 = vadd.f32 %v628_v50, %v625_v54  ;;  %v631_v1 = vadd.f32 %v629_v51, %v626_v55  ;;  %v66_v54 = vld [vmem:[%s2214_s3 + $0x38] sm:$0xff] }
 0x3ba   :  { %v632_v2 = vmul.f32 %v630_v63, %v196_v60  ;;  %v633_v3 = vmul.f32 %v631_v1, %v201_v62  ;;  %v636_v5 = vrot.slane %v630_v63, 4  ;;  %v639_v7 = vmul.f32 %v631_v1, %v206_v59 }
 0x3bb   :  { %v646_v9 = vrot.slane %v631_v1, 4  ;;  %v650_v11 = vmul.f32 %v630_v63, %v206_v59 }
 0x3bc   :  { %v634_v12 = vadd.f32 %v633_v3, %v632_v2  ;;  %v638_v13 = vmul.f32 %v636_v5, %v206_v59  ;;  %v641_v15 = vrot.slane %v639_v7, 4  ;;  %v644_v16 = vmul.f32 %v636_v5, %v196_v60  ;;  %v763_v5 = vld [vmem:[%s2218_s11] sm:$0xff] }
 0x3bd   :  { %v648_v18 = vmul.f32 %v646_v9, %v201_v62  ;;  %v651_v19 = vmul.f32 %v646_v9, %v206_v59  ;;  %1562 = vmatprep.mubr.msk.f32.mxu1 %vm400_vm7, %v763_v5  ;;  %v764_v9 = vld [vmem:[%s2218_s11 + $0x8] sm:$0xff] }
 0x3be   :  { %v643_v21 = vsub.f32 %v638_v13, %v641_v15 }
 0x3bf   :  { %v649_v8 = vadd.f32 %v648_v18, %v644_v16  ;;  %v653_v31 = vrot.slane %v651_v19, 4 }
 0x3c0   :  { %v657_v52 = vrot.slane %v643_v21, 4 }
 0x3c1   :  { %v655_v23 = vadd.f32 %v653_v31, %v650_v11  ;;  %v660_v61 = vrot.slane %v649_v8, 4 }
 0x3c2   :  { %v662_v32 = vsel %vm298_vm6, %v634_v12, %v657_v52 }
 0x3c3   :  { %v663_v36 = vsel %vm298_vm6, %v660_v61, %v655_v23  ;;  %v665_v38 = vrot.slane %v662_v32, 4 }
 0x3c4   :  { %v676_v39 = vrot.slane %v663_v36, 4 }
 0x3c5   :  { %v667_v43 = vsel %vm298_vm6, %v662_v32, %v665_v38  ;;  %v670_v44 = vsel %vm298_vm6, %v665_v38, %v662_v32 }
 0x3c6   :  { %v668_v45 = vmul.f32 %v667_v43, %v1990_v53  ;;  %v669_v46 = vmul.f32 %v667_v43, %v1995_v56  ;;  %v671_v47 = vmul.f32 %v670_v44, %v61_v33  ;;  %v672_v48 = vmul.f32 %v670_v44, %v62_v35 }
 0x3c7   :  { %v678_v50 = vsel %vm298_vm6, %v663_v36, %v676_v39  ;;  %v683_v51 = vsel %vm298_vm6, %v676_v39, %v663_v36 }
 0x3c8   :  { %v673_v55 = vadd.f32 %v671_v47, %v668_v45  ;;  %v679_v59 = vmul.f32 %v678_v50, %v2000_v57  ;;  %v680_v53 = vmul.f32 %v678_v50, %v2005_v58  ;;  %v674_v56 = vadd.f32 %v672_v48, %v669_v46 }
 0x3c9   :  { %v684_v62 = vmul.f32 %v683_v51, %v65_v49  ;;  %v685_v63 = vmul.f32 %v683_v51, %v66_v54 }
 0x3ca   :  { %v681_v60 = vadd.f32 %v679_v59, %v673_v55  ;;  %v682_v1 = vadd.f32 %v680_v53, %v674_v56 }
 0x3cc   :  { %v686_v2 = vadd.f32 %v684_v62, %v681_v60  ;;  %v687_v3 = vadd.f32 %v685_v63, %v682_v1 }
 0x3ce   :  { %1555 = vmatprep.mubr.f32.mxu0 %v686_v2 }
 0x3cf   :  { %1556 = vmatmul.mubr.f32.vlgmr.msra.gmra.mrb[14].mxu0 %v687_v3 }
 0x3d0   :  { %1607 = vmatprep.mubr.msk.f32.mxu0 %vm1758_vm4, %v1757_v4 }
 0x4a2   :  { %v1557_v57 = vpop.f32.mrb[14].mxu0 }
 0x4a3   :  { %v754_v58 = vpop.f32.mrb[15].mxu0 }
 0x4a4   :  { %v1692_v7 = vpack.c.bf16 %v1557_v57, %v754_v58 }
 0x4a6   :  { %1693 = vmatprep.subr.bf16.mxu1 %v1692_v7 }
 0x4a7   :  { %1695 = vmatpush3.bf16.msra.mxu1 %v1692_v7 }
 0x4a8   :  { %1565 = vmatprep.subr.mxu1 %v1855_v6 }
 0x4aa   :  { %1563 = vmatmul.mubr.msk.f32.vlgmr.msra.gmra.mrb[4].mxu1 %vm400_vm7, %v764_v9 }
 0x4ab   :  { %1566 = vmatpush3.msra.mxu1 %v1855_v6 }
 0x4ac   :  { %1696 = vmatprep.subr.bf16.mxu1 %v1755_v0 }
 0x57d   :  { %v1564_v11 = vpop.f32.mrb[4].mxu1 }
 0x57e   :  { %v847_v12 = vmul.f32 %v1564_v11, %v1564_v11  ;;  %v837_v13 = vpop.f32.mrb[5].mxu1 }
 0x57f   :  { %v846_v15 = vmul.f32 %v837_v13, %v837_v13  ;;  %v874_v8 = vand.u32 2147483647, %v837_v13  ;;  %v873_v54 = vmax.f32 %v837_v13, 0.0 }
 0x580   :  { %v849_v16 = vrot.slane %v847_v12, 4 }
 0x581   :  { %v875_v31 = vsub.f32 0.0, %v874_v8 }
 0x582   :  { %v851_v18 = vadd.f32 %v849_v16, %v846_v15 }
 0x583   :  { %v876_v61 = vmul.f32 1.442695, %v875_v31 }
 0x584   :  { %v852_v19 = vadd.f32 %v851_v18, %v847_v12 }
 0x586   :  { %v853_v21 = vadd.f32 1e-24, %v852_v19 }
 0x588   :  { %1737 = vrsqrt.f32 %v853_v21  ;;  %vm856_vm10 = vcmp.eq.f32.partialorder %v853_v21, inf  ;;  %v859_v32 = vand.u32 2147483648, %v853_v21  ;;  %vm858_vm11 = vcmp.eq.f32.partialorder %v853_v21, 0.0 }
 0x589   :  { %1739 = vpow2.f32 %v876_v61 }
 0x592   :  { %v1738_v52 = vpop.eup %1737 }
 0x593   :  { %v855_v23 = vmul.f32 %v1738_v52, %v853_v21  ;;  %v1740_v39 = vpop.eup %1739 }
 0x594   :  { %v878_v43 = vadd.f32 1.0, %v1740_v39  ;;  %v1242_v39 = vpop.permute.xlu1 %1241 }
 0x595   :  { %v857_v33 = vsel %vm856_vm10, %v853_v21, %v855_v23  ;;  %v1163_v21 = vld [vmem:[%s2221_s6] sm:$0xff] }
 0x596   :  { %v860_v6 = vsel %vm858_vm11, %v859_v32, %v857_v33 }
 0x597   :  { %v862_v35 = vand.u32 2147483647, %v860_v6  ;;  %v861_v48 = vmax.f32 %v860_v6, 0.0 }
 0x599   :  { %v863_v36 = vsub.f32 0.0, %v862_v35  ;;  %v1237_v35 = vld [vmem:[%s2222_s13] sm:$0xff] }
 0x59b   :  { %v864_v38 = vmul.f32 1.442695, %v863_v36 }
 0x59d   :  { %1741 = vpow2.f32 %v864_v38 }
 0x59e   :  { %1743 = vlog2.f32 %v878_v43 }
 0x5a7   :  { %v1742_v44 = vpop.eup %1741 }
 0x5a8   :  { %v866_v45 = vadd.f32 1.0, %v1742_v44  ;;  %v1744_v46 = vpop.eup %1743 }
 0x5a9   :  { %v880_v50 = vmul.f32 0.6931472, %v1744_v46 }
 0x5aa   :  { %1745 = vlog2.f32 %v866_v45 }
 0x5ab   :  { %v881_v59 = vadd.f32 %v880_v50, %v873_v54 }
 0x5ad   :  { %v1361_v60 = vadd.f32 -0.6931472, %v881_v59 }
 0x5b4   :  { %v1746_v47 = vpop.eup %1745 }
 0x5b5   :  { %v868_v49 = vmul.f32 0.6931472, %v1746_v47 }
 0x5b7   :  { %v869_v51 = vadd.f32 %v868_v49, %v861_v48 }
 0x5b9   :  { %v1360_v55 = vadd.f32 -0.6931472, %v869_v51 }
 0x5bb   :  { %v872_v53 = vmul.f32 %v1738_v52, %v1360_v55 }
 0x5bd   :  { %v883_v56 = vmul.f32 %v872_v53, %v837_v13  ;;  %v885_v62 = vrot.slane %v872_v53, 4  ;;  %v888_v63 = vmul.f32 %v1564_v11, %v872_v53  ;;  %v102_v13 = vpop.permute.xlu0 %101 }
 0x5bf   :  { %v889_v1 = vsel %vm298_vm6, %v1361_v60, %v883_v56  ;;  %v887_v2 = vmul.f32 %v1564_v11, %v885_v62 }
 0x5c0   :  { %1567 = vmatprep.mubr.msk.f32.mxu1 %vm216_vm3, %v889_v1 }
 0x5c1   :  { %v890_v3 = vsel %vm298_vm6, %v887_v2, %v888_v63 }
 0x5c2   :  { %1568 = vmatmul.mubr.msk.f32.vlgmr.msra.gmra.mrb[6].mxu1 %vm216_vm3, %v890_v3 }
 0x5c3   :  { %1698 = vmatpush3.bf16.msra.mxu1 %v1883_v14  ;;  %1602 = vmatprep.mubr.msk.f32.mxu1 %vm1758_vm4, %v1757_v4 }
 0x5c4   :  { %1699 = vmatprep.subr.bf16.mxu1 %v1755_v0 }
 0x5c7   :  { %1701 = vmatpush3.bf16.msra.mxu1 %v1892_v17 }
 0x5c8   :  { %1702 = vmatprep.subr.bf16.mxu1 %v1755_v0 }
 0x5cb   :  { %1704 = vmatpush3.bf16.msra.mxu1 %v1911_v22 }
 0x5cc   :  { %1705 = vmatprep.subr.bf16.mxu1 %v1755_v0 }
 0x5cf   :  { %1707 = vmatpush3.bf16.msra.mxu1 %v1927_v26 }
 0x5d0   :  { %1708 = vmatprep.subr.bf16.mxu1 %v1755_v0 }
 0x5d3   :  { %1710 = vmatpush3.bf16.msra.mxu1 %v1943_v30 }
 0x5d4   :  { %1711 = vmatprep.subr.bf16.mxu1 %v1755_v0 }
 0x5d7   :  { %1713 = vmatpush3.bf16.msra.mxu1 %v1961_v34 }
 0x5d8   :  { %1714 = vmatprep.subr.bf16.mxu1 %v1755_v0 }
 0x5db   :  { %1716 = vmatpush3.bf16.msra.mxu1 %v1971_v37 }
 0x5dc   :  { %1717 = vmatprep.subr.bf16.mxu1 %v1755_v0 }
 0x5df   :  { %1719 = vmatpush3.bf16.msra.mxu1 %v1981_v40 }
 0x695   :  { %v1569_v14 = vpop.f32.mrb[6].mxu1 }
 0x696   :  { %v963_v17 = vpop.f32.mrb[7].mxu1  ;;  %v981_v26 = vrot.slane %v1569_v14, 4  ;;  %v978_v58 = vmul.f32 %v1569_v14, %v2082_v28  ;;  %v988_v37 = vmul.f32 %v1569_v14, %v2087_v29  ;;  %v1364_v28 = vld [vmem:[%s2219_s1] ss:$0 sm:$0xff] }
 0x697   :  { %v974_v22 = vrot.slane %v963_v17, 4  ;;  %v972_v5 = vmul.f32 %v963_v17, %v2062_v20  ;;  %v985_v57 = vmul.f32 %v963_v17, %v2067_v24  ;;  %v211_v20 = vadd.f32 %v2017_v10, %v102_v13 }
 0x698   :  { %v983_v40 = vmul.f32 %v981_v26, %v2099_v41  ;;  %v990_v9 = vmul.f32 %v981_v26, %v2104_v42  ;;  %v1078_v41 = vld [vmem:[%s2220_s12] sm:$0xf] }
 0x699   :  { %v976_v30 = vmul.f32 %v974_v22, %v2072_v25  ;;  %v986_v34 = vmul.f32 %v974_v22, %v2077_v27 }
 0x69b   :  { %v977_v7 = vadd.f32 %v976_v30, %v972_v5  ;;  %v987_v0 = vadd.f32 %v986_v34, %v985_v57 }
 0x69d   :  { %v979_v11 = vadd.f32 %v978_v58, %v977_v7  ;;  %v989_v12 = vadd.f32 %v988_v37, %v987_v0 }
 0x69f   :  { %v984_v25 = vadd.f32 %v983_v40, %v979_v11  ;;  %v991_v15 = vadd.f32 %v990_v9, %v989_v12 }
 0x6a1   :  { %v994_v24 = vrot.slane %v991_v15, 4  ;;  %v992_v16 = vmul.f32 %v984_v25, %v211_v20 }
 0x6a3   :  { %v996_v27 = vmul.f32 %v994_v24, %v211_v20 }
 0x6a5   :  { %v998_v18 = vrot.slane %v996_v27, 4 }
 0x6a7   :  { %v1000_v29 = vadd.f32 %v998_v18, %v992_v16 }
 0x6a9   :  { %v1007_v19 = vmul.f32 %v1364_v28, %v1000_v29 }
 0x6ab   :  { %1603 = vmatmul.mubr.f32.vlgmr.msra.gmra.mrb[8].mxu1 %v1007_v19 }
 0x77e   :  { %v1074_v42 = vpop.f32.mrb[8].mxu1 }
 0x77f   :  { %v1604_v10 = vpop.f32.mrb[9].mxu1  ;;  %1606 = vmatpush3.msk.msra.mxu0 %vm298_vm6, %v1074_v42 }
 0x780   :  { %1608 = vmatmul.mubr.msk.f32.vlgmr.msra.gmra.mrb[16].mxu0 %vm1079_vm12, %v1078_v41  ;;  %1610 = vmatprep.subr.mxu0 %v1757_v4 }
 0x781   :  { %1612 = vmatprep.mubr.msk.f32.mxu0 %vm1758_vm4, %v1757_v4  ;;  %1611 = vmatpush3.msra.mxu0 %v1163_v21 }
 0x782   :  { %1615 = vmatprep.subr.mxu0 %v1757_v4 }
 0x853   :  { %v1152_v8 = vpop.f32.mrb[16].mxu0 }
 0x854   :  { %v1156_v31 = vsub.f32 0.0, %v1152_v8  ;;  %v1609_v52 = vpop.f32.mrb[17].mxu0 }
 0x856   :  { %v1157_v23 = vmul.f32 1.442695, %v1156_v31 }
 0x858   :  { %1747 = vpow2.f32 %v1157_v23 }
 0x862   :  { %v1748_v61 = vpop.eup %1747 }
 0x863   :  { %v1159_v32 = vadd.f32 1.0, %v1748_v61 }
 0x865   :  { %1749 = vrcp.f32 %v1159_v32 }
 0x86f   :  { %v1750_v33 = vpop.eup %1749 }
 0x870   :  { %v1162_v6 = vmul.f32 %v1750_v33, %v1152_v8 }
 0x872   :  { %1613 = vmatmul.mubr.msk.f32.vlgmr.msra.gmra.mrb[18].mxu0 %vm216_vm3, %v1162_v6 }
 0x873   :  { %1617 = vmatprep.mubr.msk.f32.mxu0 %vm1758_vm4, %v1757_v4 }
 0x945   :  { %v1233_v36 = vpop.f32.mrb[18].mxu0 }
 0x946   :  { %v1614_v38 = vpop.f32.mrb[19].mxu0  ;;  %1616 = vmatpush3.msk.msra.mxu0 %vm298_vm6, %v1233_v36 }
 0x947   :  { %1618 = vmatmul.mubr.msk.f32.vlgmr.msra.gmra.mrb[20].mxu0 %vm1079_vm12, %v1237_v35 }
 0xa1a   :  { %v1316_v43 = vpop.f32.mrb[20].mxu0 }
 0xa1b   :  { %v1317_v44 = vadd.f32 %v1316_v43, %v1242_v39  ;;  %v1619_v45 = vpop.f32.mrb[21].mxu0 }
 0xa1d   :  { %v1321_v46 = vsel %vm1320_vm13, %v1317_v44, -inf }
 0xa1e   :  { %v1322_v47 = vrot.slane %v1321_v46, 4 }
 0xa20   :  { %v1323_v48 = vmax.f32 %v1321_v46, %v1322_v47 }
 0xa22   :  { %v1324_v4 = vrot.slane %v1323_v48, 2 }
 0xa24   :  { %v1325_v49 = vmax.f32 %v1323_v48, %v1324_v4 }
 0xa26   :  { %v1326_v50 = vrot.slane %v1325_v49, 1 }
 0xa28   :  { %v1327_v51 = vmax.f32 %v1325_v49, %v1326_v50 }
 0xa2a   :  { %v1328_v54 = vsub.f32 %v1317_v44, %v1327_v51 }
 0xa2c   :  { %v1329_v55 = vmul.f32 1.442695, %v1328_v54 }
 0xa2e   :  { %1751 = vpow2.f32 %v1329_v55 }
 0xa38   :  { %v1752_v59 = vpop.eup %1751 }
 0xa39   :  { %v1331_v53 = vsel %vm1320_vm13, %v1752_v59, 0.0 }
 0xa3a   :  { %v1332_v56 = vrot.slane %v1331_v53, 4 }
 0xa3c   :  { %v1333_v60 = vadd.f32 %v1332_v56, %v1331_v53 }
 0xa3e   :  { %v1334_v62 = vrot.slane %v1333_v60, 2 }
 0xa40   :  { %v1335_v63 = vadd.f32 %v1334_v62, %v1333_v60 }
 0xa42   :  { %v1336_v1 = vrot.slane %v1335_v63, 1 }
 0xa44   :  { %v1337_v2 = vadd.f32 %v1336_v1, %v1335_v63 }
 0xa46   :  { %1753 = vrcp.f32 %v1337_v2 }
 0xa50   :  { %v1754_v3 = vpop.eup %1753 }
 0xa51   :  { %v1339_v14 = vmul.f32 %v1754_v3, %v1752_v59 }
 0xa53   :  { %1340 = vst.msk [vmem:[%s2223_s15] sm:$0xff] %vm1320_vm13, %v1339_v14 }

</bundles_post_ra>
